<compile_context>
chip_gen: v7x
topology: tpu7x:2x2x1
jax: 0.10.0
libtpu: 0.0.40
codegen_flags: <defaults>
</compile_context>

<pallas_src>
import math
from functools import partial

import numpy as np
import jax
import jax.numpy as jnp
from jax.experimental import pallas as pl
from jax.experimental.pallas import tpu as pltpu


def _rff_kernel(coords_ref, bt2_ref, phase_ref, a2_ref, out_ref, *, use_mxu):
    # coords_ref: (TM, F)    VMEM tile of flattened coords
    # bt2_ref:    (F, 2D)    [bvals^T | bvals^T], resident every grid step
    # phase_ref:  (1, 2D)    [pi/4]*D ++ [pi/4 + pi/2]*D   (cos == shifted sin)
    # a2_ref:     (1, 2D)    [avals | avals]
    # out_ref:    (TM, 2D)   one lane-dense store of [sin | cos]
    x = coords_ref[...]
    bt2 = bt2_ref[...]
    phase = phase_ref[...]
    if use_mxu:
        proj = jnp.dot(x, bt2, preferred_element_type=jnp.float32) + phase
    else:
        # Tiny K: (TM, F) @ (F, 2D) with F ~ 2 wastes the MXU; unroll on the
        # VPU instead, fusing the phase add into the first term.  This rides
        # for free under the EUP (sin) bottleneck.
        f_dim = bt2.shape[0]
        proj = x[:, 0:1] * bt2[0:1, :] + phase
        for f in range(1, f_dim):
            proj = proj + x[:, f:f + 1] * bt2[f:f + 1, :]
    out_ref[...] = (a2_ref[...] * jnp.sin(proj)).astype(out_ref.dtype)


def _round_up(x, m):
    return ((x + m - 1) // m) * m


def _round_down(x, m):
    return (x // m) * m


def _vmem_budget_bytes():
    # Leave ~25% headroom below physical VMEM (64 MiB on v7x, 128 MiB v5e/v6e).
    try:
        cap = int(getattr(pltpu.get_tpu_info(), "vmem_capacity_bytes"))
    except Exception:
        cap = 64 << 20  # conservative fallback (v7x-sized)
    return (cap * 3) // 4


def _tensorcores_per_chip():
    # v5e / v6e have a single TensorCore; v4 / v5p (megacore) and v7x have two.
    try:
        kind = jax.devices()[0].device_kind.lower()
    except Exception:
        return 2
    if "lite" in kind or "v5e" in kind or "v6e" in kind:
        return 1
    return 2


def pos_encoding_rff(coords, bvals, avals, *, tile_m=4096, out_dtype=jnp.float32):
    """coords: (B, ..., in_features) or (B, in_features). Returns RFF encoding.

    bvals: (out_dim, in_features), avals: (out_dim,).
    tile_m: rows per grid step (sweep 2048/4096/8192 per chip). Compute stays
    f32; pass out_dtype=jnp.bfloat16 to halve the (dominant) output traffic if
    downstream tolerates bf16 activations.
    """
    in_dim = coords.ndim
    out_dim, in_features = bvals.shape
    enc_dim = 2 * out_dim

    b = coords.shape[0]
    coords3 = coords.reshape(b, -1, in_features)
    n = coords3.shape[1]
    m = b * n

    flat = coords3.reshape(m, in_features)
    if flat.dtype != jnp.float32:
        flat = flat.astype(jnp.float32)

    out_bytes = np.dtype(out_dtype).itemsize
    # VMEM per row, double-buffered: the f32 input block lane-pads to >=128
    # lanes, the output block lane-pads to a multiple of 128 lanes.
    per_row = 2 * (_round_up(in_features, 128) * 4 +
                   _round_up(enc_dim, 128) * out_bytes)
    budget = _vmem_budget_bytes()
    tile_cap = max(8, _round_down(budget // per_row, 8))

    tile = max(8, min(_round_up(min(tile_m, m), 8), tile_cap))
    # Shard across both TensorCores on chips that have two (v4/v5p/v7x).
    cores = _tensorcores_per_chip()
    if cores > 1 and m > 8 and pl.cdiv(m, tile) < cores:
        tile = max(8, _round_up(pl.cdiv(m, cores), 8))
    grid_m = pl.cdiv(m, tile)

    # Duplicated parameters so one lane-dense sin covers [sin | cos].
    bt2 = jnp.concatenate([bvals.T, bvals.T], axis=1).astype(jnp.float32)  # (F, 2D)
    phase = jnp.concatenate(
        [jnp.full((1, out_dim), math.pi / 4.0, jnp.float32),
         jnp.full((1, out_dim), math.pi / 4.0 + math.pi / 2.0, jnp.float32)],
        axis=1)                                                            # (1, 2D)
    av = avals.reshape(1, out_dim).astype(jnp.float32)
    a2 = jnp.concatenate([av, av], axis=1)                                 # (1, 2D)

    vmem_limit = int(min(budget, max(32 << 20, per_row * tile + (1 << 20))))

    cost = pl.CostEstimate(
        flops=2 * m * in_features * enc_dim + 2 * m * enc_dim,
        transcendentals=m * enc_dim,
        bytes_accessed=(m * in_features * 4 + m * enc_dim * out_bytes
                        + (in_features + 2) * enc_dim * 4),
    )

    kernel = partial(_rff_kernel, use_mxu=in_features >= 16)
    out = pl.pallas_call(
        kernel,
        out_shape=jax.ShapeDtypeStruct((m, enc_dim), out_dtype),
        grid_spec=pltpu.PrefetchScalarGridSpec(
            num_scalar_prefetch=0,
            grid=(grid_m,),
            in_specs=[
                pl.BlockSpec((tile, in_features), lambda i: (i, 0)),
                pl.BlockSpec((in_features, enc_dim), lambda i: (0, 0)),
                pl.BlockSpec((1, enc_dim), lambda i: (0, 0)),
                pl.BlockSpec((1, enc_dim), lambda i: (0, 0)),
            ],
            out_specs=pl.BlockSpec((tile, enc_dim), lambda i: (i, 0)),
        ),
        compiler_params=pltpu.CompilerParams(
            dimension_semantics=("parallel",),
            vmem_limit_bytes=vmem_limit,
        ),
        cost_estimate=cost,
    )(flat, bt2, phase, a2)

    if in_dim == 2:
        return out.reshape(b, enc_dim)
    return out.reshape(b, n, enc_dim)


def _reference(coords, bvals, avals):
    in_dim = coords.ndim
    in_features = bvals.shape[1]
    b = coords.shape[0]
    c = coords.reshape(b, -1, in_features).astype(jnp.float32)
    proj = c @ bvals.T.astype(jnp.float32) + jnp.float32(math.pi / 4.0)
    enc = jnp.concatenate(
        [avals * jnp.sin(proj), avals * jnp.cos(proj)], axis=-1
    )
    if in_dim == 2:
        return enc.reshape(b, 2 * bvals.shape[0])
    return enc.reshape(b, -1, 2 * bvals.shape[0])


if __name__ == "__main__":
    key = jax.random.PRNGKey(0)
    k_coords, k_b = jax.random.split(key)

    # Module config: in_features=2, out_dim=64, omega_0=1 -> encoding dim 128.
    in_features = 2
    rff_dim = 64
    omega_0 = 1.0

    # Deterministic "parameters" (bvals ~ N(0,1) * omega_0, avals = ones).
    bvals = omega_0 * jax.random.normal(k_b, (rff_dim, in_features), jnp.float32)
    avals = jnp.ones((rff_dim,), jnp.float32)

    # Example input: batch=2, 64 coordinates, 2 features each.
    coords = jax.random.normal(k_coords, (2, 64, in_features), jnp.float32)

    out = jax.jit(partial(pos_encoding_rff, bvals=bvals, avals=avals))(coords)
    out = jax.block_until_ready(out)

    ref = _reference(coords, bvals, avals)
    assert out.shape == (2, 64, 2 * rff_dim), out.shape
    assert jnp.allclose(out, ref, atol=1e-5, rtol=1e-5), float(
        jnp.max(jnp.abs(out - ref))
    )
    print("KERNEL_OK")
</pallas_src>

<mosaic_0001>
module attributes {stable_mosaic.version = 11 : i64} {
  func.func @_rff_kernel(%arg0: i32, %arg1: memref<64x2xf32, #tpu.memory_space<vmem>>, %arg2: memref<2x128xf32, #tpu.memory_space<vmem>>, %arg3: memref<1x128xf32, #tpu.memory_space<vmem>>, %arg4: memref<1x128xf32, #tpu.memory_space<vmem>>, %arg5: memref<64x128xf32, #tpu.memory_space<vmem>>) attributes {dimension_semantics = [#tpu.dimension_semantics<parallel>], iteration_bounds = array<i64: 2>, scalar_prefetch = 0 : i64, scratch_operands = 0 : i64, tpu.core_type = #tpu.core_type<tc>, window_params = [{transform_indices = @transform_0, window_bounds = array<i64: 64, 2>}, {pipeline_mode = #tpu.pipeline_mode<synchronous>, transform_indices = @transform_1, window_bounds = array<i64: 2, 128>}, {pipeline_mode = #tpu.pipeline_mode<synchronous>, transform_indices = @transform_2, window_bounds = array<i64: 1, 128>}, {pipeline_mode = #tpu.pipeline_mode<synchronous>, transform_indices = @transform_3, window_bounds = array<i64: 1, 128>}, {transform_indices = @transform_4, window_bounds = array<i64: 64, 128>}]} {
    %c0 = arith.constant 0 : index
    %c0_0 = arith.constant 0 : index
    %0 = vector.load %arg1[%c0, %c0_0] : memref<64x2xf32, #tpu.memory_space<vmem>>, vector<64x2xf32>
    %c0_1 = arith.constant 0 : index
    %c0_2 = arith.constant 0 : index
    %1 = vector.load %arg2[%c0_1, %c0_2] : memref<2x128xf32, #tpu.memory_space<vmem>>, vector<2x128xf32>
    %c0_3 = arith.constant 0 : index
    %c0_4 = arith.constant 0 : index
    %2 = vector.load %arg3[%c0_3, %c0_4] : memref<1x128xf32, #tpu.memory_space<vmem>>, vector<1x128xf32>
    %3 = vector.extract_strided_slice %0 {offsets = [0, 0], sizes = [64, 1], strides = [1, 1]} : vector<64x2xf32> to vector<64x1xf32>
    %4 = vector.extract_strided_slice %1 {offsets = [0, 0], sizes = [1, 128], strides = [1, 1]} : vector<2x128xf32> to vector<1x128xf32>
    %5 = vector.broadcast %3 : vector<64x1xf32> to vector<64x128xf32>
    %6 = vector.broadcast %4 : vector<1x128xf32> to vector<64x128xf32>
    %7 = arith.mulf %5, %6 : vector<64x128xf32>
    %8 = vector.broadcast %2 : vector<1x128xf32> to vector<64x128xf32>
    %9 = arith.addf %7, %8 : vector<64x128xf32>
    %10 = vector.extract_strided_slice %0 {offsets = [0, 1], sizes = [64, 1], strides = [1, 1]} : vector<64x2xf32> to vector<64x1xf32>
    %11 = vector.extract_strided_slice %1 {offsets = [1, 0], sizes = [1, 128], strides = [1, 1]} : vector<2x128xf32> to vector<1x128xf32>
    %12 = vector.broadcast %10 : vector<64x1xf32> to vector<64x128xf32>
    %13 = vector.broadcast %11 : vector<1x128xf32> to vector<64x128xf32>
    %14 = arith.mulf %12, %13 : vector<64x128xf32>
    %15 = arith.addf %9, %14 : vector<64x128xf32>
    %c0_5 = arith.constant 0 : index
    %c0_6 = arith.constant 0 : index
    %16 = vector.load %arg4[%c0_5, %c0_6] : memref<1x128xf32, #tpu.memory_space<vmem>>, vector<1x128xf32>
    %17 = math.sin %15 : vector<64x128xf32>
    %18 = vector.broadcast %16 : vector<1x128xf32> to vector<64x128xf32>
    %19 = arith.mulf %18, %17 : vector<64x128xf32>
    %c0_7 = arith.constant 0 : index
    %c0_8 = arith.constant 0 : index
    %20 = vector.load %arg5[%c0_7, %c0_8] : memref<64x128xf32, #tpu.memory_space<vmem>>, vector<64x128xf32>
    tpu.vector_store %arg5[%c0_7, %c0_8], %19 {strides = array<i32>} : memref<64x128xf32, #tpu.memory_space<vmem>>, vector<64x128xf32>,
    return
  }
  func.func @transform_0(%arg0: i32) -> (i32, i32) {
    %c0_i32 = arith.constant 0 : i32
    %c0_i32_0 = arith.constant 0 : i32
    return %arg0, %c0_i32 : i32, i32
  }
  func.func @transform_1(%arg0: i32) -> (i32, i32) {
    %c0_i32 = arith.constant 0 : i32
    %c0_i32_0 = arith.constant 0 : i32
    %c0_i32_1 = arith.constant 0 : i32
    return %c0_i32, %c0_i32_0 : i32, i32
  }
  func.func @transform_2(%arg0: i32) -> (i32, i32) {
    %c0_i32 = arith.constant 0 : i32
    %c0_i32_0 = arith.constant 0 : i32
    %c0_i32_1 = arith.constant 0 : i32
    return %c0_i32, %c0_i32_0 : i32, i32
  }
  func.func @transform_3(%arg0: i32) -> (i32, i32) {
    %c0_i32 = arith.constant 0 : i32
    %c0_i32_0 = arith.constant 0 : i32
    %c0_i32_1 = arith.constant 0 : i32
    return %c0_i32, %c0_i32_0 : i32, i32
  }
  func.func @transform_4(%arg0: i32) -> (i32, i32) {
    %c0_i32 = arith.constant 0 : i32
    %c0_i32_0 = arith.constant 0 : i32
    return %arg0, %c0_i32 : i32, i32
  }
}

</mosaic_0001>

<bundles_post_ra>
// kernel: pos_encoding_rff.1
= control target key start
LH: loop header
LB: loop body
LE: loop exit
PB: predicated region body
PF: predicated region fallthrough
CT: control target
= control target key end

     0   :  { %9 = vsyncpa [#allocation3], 0  ;;  %s2305_s0 = inlined_call_operand.vmem [shape: f32[128,2], index: 0, kind: input, shape index: {}]   ;;  %s2306_s1 = inlined_call_operand.vmem [shape: f32[2,128], index: 1, kind: input, shape index: {}]   ;;  %s2307_s2 = inlined_call_operand.vmem [shape: f32[1,128], index: 2, kind: input, shape index: {}]   ;;  %s2308_s3 = inlined_call_operand.vmem [shape: f32[1,128], index: 3, kind: input, shape index: {}]   ;;  %s2309_s4 = inlined_call_operand.hbm [shape: f32[128,128], index: 4, kind: output, shape index: {}]  }
   0x1   :  { %11 = vsyncpa [#allocation3 + $0x1], 0  ;;  %s1523_s15 = smov 0   ;;  %s1525_s16 = smov 0  }
   0x2   :  { %s1527_s17 = smov 0   ;;  %s1529_s18 = smov 0  }
   0x3 LB: > { %s1544_s19 = sadd.s32 4294967295, %s1485_s18   ;;  %s1258_s20 = sadd.s32 4294967294, %s1485_s18   ;;  %s1485_s18 = sphi %s1529_s18, %s2327_s18   ;;  %s1481_s17 = sphi %s1527_s17, %s2326_s17   ;;  %s1477_s16 = sphi %s1525_s16, %s2325_s16   ;;  %s1473_s15 = sphi %s1523_s15, %s2324_s15  }
   0x4   : > { %s1548_s21 = sadd.s32 1, %s1485_s18   ;;  %s113_s22 = sadd.s32 1, %s1481_s17 }
   0x5   : > { %s110_s23 = ssub.s32 %s1485_s18, %s1548_s21  ;;  %p123_p0 = scmp.ne.s32.totalorder %s1481_s17, %s1477_s16 }
   0x6   : > { %p111_p1 = scmp.eq.s32.totalorder %s110_s23, 0  ;;  %p124_p2 = scmp.eq.s32.totalorder %s1544_s19, 1 }
   0x7   : > { %p129_p3 = scmp.ne.s32.totalorder %s1477_s16, %s1473_s15  ;;  %p130_p4 = scmp.eq.s32.totalorder %s1258_s20, 1 }
   0x8   : > { %s1559_s24 = scalar_select %p111_p1, %s1481_s17, %s113_s22  }
   0x9   : > { %p1561_p5 = por %p124_p2, %p123_p0  ;;  %p1565_p6 = por %p130_p4, %p129_p3 }
   0xa   : > { %p1261_p7 = scmp.ge.s32.totalorder %s1485_s18, 1  ;;  %p166_p8 = scmp.lt.s32.totalorder %s1485_s18, 3 }
   0xc   : > { %p167_p9 = pnand %p1261_p7, %p166_p8 }
   0xd   : > { %s1263_s27 = sshll.u32 (!%p167_p9), %s1544_s19, 3  ;;  %v1487_v0 = vmov (!%p167_p9), 0   ;;  %v1488_v9 = vmov (!%p167_p9), 1   ;;  %v249_v10 = vlaneseq (!%p167_p9)  ;;  %v207_v15 = vld [vmem:[%s2306_s1] sm:$0x3] (!%p167_p9)  ;;  %s189_s10 = sand.u32 (!%p167_p9), 1, %s1477_s16  }
   0xe   : > { %170 = sbr.rel (%p167_p9) target bundleno = 428 (0x1ac), region = 36  ;;  %1387 = vset.pattern.permute.xlu1 (!%p167_p9), %v1487_v0  ;;  %1386 = vset.pattern.permute.xlu0 (!%p167_p9), %v1487_v0  ;;  %p193_p10 = scmp.lt.s32.totalorder (!%p167_p9), %s1263_s27, 15  ;;  %v1581_v23 = vld [vmem:[%s2307_s2] ss:$0 sm:$0xff] (!%p167_p9) }
   0xf   : > { %v250_v11 = vshrl.u32 (!%p167_p9), %v249_v10, 7  ;;  %s1262_s11 = sshll.u32 (!%p167_p9), %s189_s10, 6  ;;  %s1304_s20 = sshll.u32 (!%p167_p9), %s1544_s19, 10 }
  0x10   : > { %s1903_s14 = scalar_lea.vmem (!%p167_p9), [#allocation2], %s1262_s11  ;;  %s2264_s19 = scalar_lea.sflag (!%p167_p9), [#allocation3], %s189_s10 }
  0x11   : > { %v251_v14 = vsub.s32 (!%p167_p9), 0, %v250_v11  ;;  %v309_v24 = vsub.s32 (!%p167_p9), 1, %v250_v11  ;;  %s1196_s22 = sshll.u32 (!%p167_p9), %s1903_s14, 4  ;;  %s1495_s6 = smov (!%p167_p9), [#allocation2]   ;;  %s2256_s22 = int_to_ptr.vmem [resolvable:$true] %s1196_s22 }
  0x12   : > { %s1427_s7 = sshll.u32 (!%p167_p9), %s1495_s6, 4  ;;  %s1428_s7 = int_to_ptr.vmem [resolvable:$false] %s1427_s7 }
  0x13   : > { %v252_v18 = vrot.slane (!%p167_p9), %v207_v15, %v251_v14  ;;  %v1589_v33 = vrot.slane (!%p167_p9), %v207_v15, %v309_v24  ;;  %v1493_v24 = vmov (!%p167_p9), 920167782   ;;  %s1429_s8 = scalar_lea.vmem (!%p167_p9), %s1428_s7, 2048  ;;  %p1430_p0 = scmp.lt.s32.totalorder (!%p167_p9), %s2256_s22, %s1428_s7 }
  0x15   : > { %s2329_s27 = smov (!%p193_p10, %s1263_s27), 15 }
  0x16   : > { %s1264_s28 = sshll.u32 %s2329_s27, 3 }
  0x17   : > { %s196_s5 = scalar_lea.vmem %s2305_s0, %s1264_s28  ;;  %s2254_s28 = scalar_lea.hbm %s2309_s4, %s1304_s20 }
  0x18   : > { %v201_v1 = vld [vmem:[%s196_s5 + $0x10] sm:$0xff]  ;;  %v199_v2 = vld [vmem:[%s196_s5] sm:$0xff]  ;;  %v202_v3 = vld [vmem:[%s196_s5 + $0x18] sm:$0xff] }
  0x19   : > { %221 = vperm.xlu1 %1387, %v201_v1   ;;  %211 = vperm.xlu0 %1386, %v199_v2   ;;  %v200_v4 = vld [vmem:[%s196_s5 + $0x8] sm:$0xff]  ;;  %v203_v6 = vld [vmem:[%s196_s5 + $0x20] sm:$0xff]  ;;  %v206_v7 = vld [vmem:[%s196_s5 + $0x38] sm:$0xff] }
  0x1a   : > { %v204_v5 = vld [vmem:[%s196_s5 + $0x28] sm:$0xff]  ;;  %v205_v8 = vld [vmem:[%s196_s5 + $0x30] sm:$0xff]  ;;  %s1423_s5 = scalar_lea.vmem %s2256_s22, 1024 }
  0x1b   : > { %p1424_p11 = scmp.ne.s32.totalorder %s2256_s22, %s1423_s5  ;;  %p1431_p1 = scmp.lt.s32.totalorder %s1429_s8, %s1423_s5 }
  0x1d   : > { %226 = vperm.xlu1 %1387, %v202_v3   ;;  %216 = vperm.xlu0 %1386, %v200_v4   ;;  %p1425_p12 = pnand %p1424_p11, %p1561_p5  ;;  %p1432_p2 = por %p1431_p1, %p1430_p0 }
  0x1f   : > { %p1426_p13 = pneg %p1425_p12 }
  0x21   : > { %236 = vperm.xlu1 %1387, %v204_v5   ;;  %231 = vperm.xlu0 %1386, %v203_v6   ;;  %p1433_p3 = pnand %p1432_p2, %p1426_p13 }
  0x25   : > { %246 = vperm.xlu1 %1387, %v206_v7   ;;  %241 = vperm.xlu0 %1386, %v205_v8  }
  0x29   : > { %1389 = vset.pattern.permute.xlu1 %v1488_v9  ;;  %1388 = vset.pattern.permute.xlu0 %v1488_v9 }
  0x2a   : > { %280 = vperm.xlu1 %1389, %v200_v4   ;;  %276 = vperm.xlu0 %1388, %v199_v2  }
  0x2e   : > { %284 = vperm.xlu1 %1389, %v201_v1   ;;  %288 = vperm.xlu0 %1388, %v202_v3  }
  0x32   : > { %292 = vperm.xlu1 %1389, %v203_v6   ;;  %296 = vperm.xlu0 %1388, %v204_v5  }
  0x36   : > { %300 = vperm.xlu1 %1389, %v205_v8   ;;  %304 = vperm.xlu0 %1388, %v206_v7  }
  0x98   : > { %v222_v12 = vpop.permute.xlu1 %221  ;;  %v212_v13 = vpop.permute.xlu0 %211 }
  0x99   : > { %v253_v31 = vmul.f32 %v252_v18, %v212_v13  ;;  %v255_v42 = vmul.f32 %v252_v18, %v222_v12  ;;  %v1489_v13 = vmov 683565275  }
  0x9b   : > { %v267_v38 = vadd.f32 %v1581_v23, %v253_v31  ;;  %v269_v50 = vadd.f32 %v1581_v23, %v255_v42 }
  0x9c   : > { %v227_v16 = vpop.permute.xlu1 %226  ;;  %v217_v17 = vpop.permute.xlu0 %216 }
  0x9d   : > { %v254_v32 = vmul.f32 %v252_v18, %v217_v17  ;;  %v1618_v1 = vmul.f32 %v252_v18, %v227_v16  ;;  %v1490_v17 = vmov 2475754826  }
  0x9f   : > { %v268_v39 = vadd.f32 %v1581_v23, %v254_v32 }
  0xa0   : > { %v237_v19 = vpop.permute.xlu1 %236  ;;  %v232_v20 = vpop.permute.xlu0 %231 }
  0xa1   : > { %v258_v21 = vmul.f32 %v252_v18, %v237_v19  ;;  %v257_v22 = vmul.f32 %v252_v18, %v232_v20  ;;  %v1491_v19 = vmov 2131351028  }
  0xa3   : > { %v1584_v25 = vadd.f32 %v1581_v23, %v258_v21  ;;  %v1587_v26 = vadd.f32 %v1581_v23, %v257_v22  ;;  %v1492_v21 = vmov 2102212464  }
  0xa4   : > { %v247_v27 = vpop.permute.xlu1 %246  ;;  %v242_v28 = vpop.permute.xlu0 %241 }
  0xa5   : > { %v260_v29 = vmul.f32 %v252_v18, %v247_v27  ;;  %v259_v30 = vmul.f32 %v252_v18, %v242_v28 }
  0xa7   : > { %v1592_v34 = vadd.f32 %v1581_v23, %v260_v29  ;;  %v1595_v35 = vadd.f32 %v1581_v23, %v259_v30 }
  0xa9   : > { %v281_v36 = vpop.permute.xlu1 %280  ;;  %v277_v37 = vpop.permute.xlu0 %276 }
  0xaa   : > { %v312_v40 = vmul.f32 %v1589_v33, %v281_v36  ;;  %v311_v41 = vmul.f32 %v1589_v33, %v277_v37  ;;  %v1494_v36 = vmov 1326507024  }
  0xac   : > { %v1601_v43 = vadd.f32 %v312_v40, %v268_v39  ;;  %v1603_v44 = vadd.f32 %v311_v41, %v267_v38 }
  0xad   : > { %v285_v45 = vpop.permute.xlu1 %284  ;;  %v289_v0 = vpop.permute.xlu0 %288 }
  0xae   : > { %v432_v46 = vand.u32 2147483647, %v1601_v43  ;;  %v435_v47 = vand.u32 2139095040, %v1601_v43  ;;  %v328_v48 = vand.u32 2147483647, %v1603_v44  ;;  %v331_v49 = vand.u32 2139095040, %v1603_v44 }
  0xaf   : > { %v313_v52 = vmul.f32 %v1589_v33, %v285_v45  ;;  %v1621_v7 = vmul.f32 %v1589_v33, %v289_v0  ;;  %vm434_vm13 = vcmp.lt.s32.totalorder %v1601_v43, 0  ;;  %vm330_vm15 = vcmp.lt.s32.totalorder %v1603_v44, 0 }
  0xb0   : > { %v436_v51 = vshrl.u32 %v435_v47, 23  ;;  %v439_v53 = vand.u32 8388607, %v432_v46  ;;  %v332_v54 = vshrl.u32 %v331_v49, 23  ;;  %v335_v55 = vand.u32 8388607, %v328_v48 }
  0xb1   : > { %v1615_v57 = vadd.f32 %v313_v52, %v269_v50  ;;  %vm1709_vm14 = vcmp.le.f32.partialorder %v432_v46, 0.7853982 }
  0xb2   : > { %v1270_v56 = vadd.s32 4294967169, %v436_v51  ;;  %v1266_v58 = vadd.s32 4294967169, %v332_v54  ;;  %v440_v60 = vor.u32 8388608, %v439_v53  ;;  %v336_v61 = vor.u32 8388608, %v335_v55 }
  0xb3   : > { %v539_v63 = vand.u32 2139095040, %v1615_v57  ;;  %v536_v11 = vand.u32 2147483647, %v1615_v57 }
  0xb4   : > { %v442_v59 = vadd.s32 1, %v1270_v56  ;;  %v338_v62 = vadd.s32 1, %v1266_v58  ;;  %v1623_v8 = vshll.u32 %v440_v60, 8  ;;  %v1627_v10 = vshll.u32 %v336_v61, 8 }
  0xb5   : > { %v540_v3 = vshrl.u32 %v539_v63, 23 }
  0xb6   : > { %vm443_vm0 = vcmp.gt.s32.totalorder %v442_v59, 0  ;;  %vm339_vm1 = vcmp.gt.s32.totalorder %v338_v62, 0 }
  0xb7   : > { %v444_v2 = vsel %vm443_vm0, %v442_v59, 0  ;;  %v340_v6 = vsel %vm339_vm1, %v338_v62, 0  ;;  %v1631_v16 = vadd.s32 4294967169, %v540_v3 }
  0xb8   : > { %v445_v4 = vshrl.u32 %v444_v2, 5  ;;  %v446_v5 = vand.u32 31, %v444_v2  ;;  %v1625_v9 = vshrl.u32 %v340_v6, 5  ;;  %v342_v15 = vand.u32 31, %v340_v6 }
  0xba   : > { %v447_v12 = vsub.s32 32, %v446_v5  ;;  %v449_v14 = vshll.u32 %v1489_v13, %v446_v5  ;;  %v452_v18 = vshll.u32 %v1490_v17, %v446_v5  ;;  %v455_v20 = vshll.u32 %v1491_v19, %v446_v5 }
  0xbb   : > { %v458_v22 = vshll.u32 %v1492_v21, %v446_v5  ;;  %v461_v27 = vshll.u32 %v1493_v24, %v446_v5  ;;  %vm464_vm2 = vcmp.lt.s32.totalorder %v445_v4, 1  ;;  %vm465_vm3 = vcmp.lt.s32.totalorder %v445_v4, 2 }
  0xbc   : > { %v450_v28 = vshrl.u32 %v1490_v17, %v447_v12  ;;  %v453_v29 = vshrl.u32 %v1491_v19, %v447_v12  ;;  %v456_v30 = vshrl.u32 %v1492_v21, %v447_v12  ;;  %v448_v31 = vshrl.u32 %v1489_v13, %v447_v12 }
  0xbd   : > { %v459_v32 = vshrl.u32 %v1493_v24, %v447_v12  ;;  %v462_v37 = vshrl.u32 %v1494_v36, %v447_v12  ;;  %v343_v41 = vsub.s32 32, %v342_v15  ;;  %vm466_vm4 = vcmp.lt.s32.totalorder %v445_v4, 3 }
  0xbe   : > { %v451_v38 = vor.u32 %v450_v28, %v449_v14  ;;  %v454_v39 = vor.u32 %v453_v29, %v452_v18  ;;  %v457_v40 = vor.u32 %v456_v30, %v455_v20  ;;  %vm467_vm5 = vcmp.lt.s32.totalorder %v445_v4, 4 }
  0xbf   : > { %v460_v42 = vor.u32 %v459_v32, %v458_v22  ;;  %v463_v45 = vor.u32 %v462_v37, %v461_v27  ;;  %v345_v55 = vshll.u32 %v1489_v13, %v342_v15  ;;  %v346_v59 = vshrl.u32 %v1490_v17, %v343_v41 }
  0xc0   : > { %v468_v47 = vsel %vm464_vm2, %v448_v31, %v451_v38  ;;  %v469_v49 = vsel %vm467_vm5, %v457_v40, 2102212464  ;;  %v472_v50 = vsel %vm464_vm2, %v451_v38, %v454_v39  ;;  %v476_v51 = vsel %vm464_vm2, %v454_v39, %v457_v40 }
  0xc1   : > { %v470_v52 = vsel %vm466_vm4, %v454_v39, %v469_v49  ;;  %v473_v53 = vsel %vm467_vm5, %v460_v42, 920167782  ;;  %v477_v54 = vsel %vm467_vm5, %v463_v45, 1326507024  ;;  %v348_v60 = vshll.u32 %v1490_v17, %v342_v15 }
  0xc2   : > { %v474_v56 = vsel %vm466_vm4, %v457_v40, %v473_v53  ;;  %v478_v58 = vsel %vm466_vm4, %v460_v42, %v477_v54  ;;  %v471_v61 = vsel %vm465_vm3, %v468_v47, %v470_v52  ;;  %v349_v0 = vshrl.u32 %v1491_v19, %v343_v41 }
  0xc3   : > { %v475_v62 = vsel %vm465_vm3, %v472_v50, %v474_v56  ;;  %v479_v63 = vsel %vm465_vm3, %v476_v51, %v478_v58  ;;  %v347_v12 = vor.u32 %v346_v59, %v345_v55  ;;  %v351_v18 = vshll.u32 %v1491_v19, %v342_v15 }
  0xc4   : > { %v1654_v2 = vmul.u32.u64.low %v1623_v8, %v479_v63  ;;  %v1655_v3 = vmul.u32.u64.high %v1623_v8, %v479_v63, %v1654_v2  ;;  %v1658_v5 = vmul.u32.u64.low %v1623_v8, %v475_v62  ;;  %v1659_v6 = vmul.u32.u64.high %v1623_v8, %v475_v62, %v1658_v5 }
  0xc5   : > { %v350_v14 = vor.u32 %v349_v0, %v348_v60  ;;  %v352_v20 = vshrl.u32 %v1492_v21, %v343_v41  ;;  %v344_v22 = vshrl.u32 %v1489_v13, %v343_v41  ;;  %v354_v4 = vshll.u32 %v1492_v21, %v342_v15 }
  0xc6   : > { %v355_v27 = vshrl.u32 %v1493_v24, %v343_v41  ;;  %v358_v28 = vshrl.u32 %v1494_v36, %v343_v41  ;;  %v487_v29 = vmul.u32 %v1623_v8, %v471_v61  ;;  %v357_v31 = vshll.u32 %v1493_v24, %v342_v15 }
  0xc7   : > { %v353_v30 = vor.u32 %v352_v20, %v351_v18  ;;  %vm360_vm6 = vcmp.lt.s32.totalorder %v1625_v9, 1  ;;  %vm489_vm7 = vc.u32 %v1655_v3, %v1658_v5  ;;  %v490_v32 = vadd.s32 1, %v1659_v6 }
  0xc8   : > { %v356_v37 = vor.u32 %v355_v27, %v354_v4  ;;  %vm361_vm8 = vcmp.lt.s32.totalorder %v1625_v9, 2  ;;  %v359_v38 = vor.u32 %v358_v28, %v357_v31  ;;  %vm362_vm9 = vcmp.lt.s32.totalorder %v1625_v9, 3 }
  0xc9   : > { %vm363_vm10 = vcmp.lt.s32.totalorder %v1625_v9, 4  ;;  %v368_v39 = vsel %vm360_vm6, %v347_v12, %v350_v14  ;;  %v491_v8 = vsel %vm489_vm7, %v490_v32, %v1659_v6  ;;  %v372_v15 = vsel %vm360_vm6, %v350_v14, %v353_v30 }
  0xca   : > { %v365_v40 = vsel %vm363_vm10, %v353_v30, 2102212464  ;;  %v369_v41 = vsel %vm363_vm10, %v356_v37, 920167782  ;;  %v492_v42 = vadd.s32 %v491_v8, %v487_v29  ;;  %v364_v45 = vsel %vm360_vm6, %v344_v22, %v347_v12 }
  0xcb   : > { %v370_v47 = vsel %vm362_vm9, %v353_v30, %v369_v41  ;;  %v373_v49 = vsel %vm363_vm10, %v359_v38, 1326507024  ;;  %v366_v50 = vsel %vm362_vm9, %v350_v14, %v365_v40  ;;  %v546_v53 = vadd.s32 1, %v1631_v16 }
  0xcc   : > { %v371_v51 = vsel %vm361_vm8, %v368_v39, %v370_v47  ;;  %v374_v52 = vsel %vm362_vm9, %v356_v37, %v373_v49  ;;  %v493_v54 = vadd.s32 536870912, %v492_v42  ;;  %v543_v61 = vand.u32 8388607, %v536_v11 }
  0xcd   : > { %v375_v55 = vsel %vm361_vm8, %v372_v15, %v374_v52  ;;  %v1682_v56 = vmul.u32.u64.low %v1627_v10, %v371_v51  ;;  %v1683_v58 = vmul.u32.u64.high %v1627_v10, %v371_v51, %v1682_v56  ;;  %vm547_vm11 = vcmp.gt.s32.totalorder %v546_v53, 0 }
  0xce   : > { %v1687_v59 = vmul.u32.u64.low %v1627_v10, %v375_v55  ;;  %v1688_v60 = vmul.u32.u64.high %v1627_v10, %v375_v55, %v1687_v59  ;;  %v270_v16 = vadd.f32 %v1581_v23, %v1618_v1  ;;  %v494_v62 = vshrl.u32 %v493_v54, 30 }
  0xcf   : > { %v367_v63 = vsel %vm361_vm8, %v364_v45, %v366_v50  ;;  %v548_v0 = vsel %vm547_vm11, %v546_v53, 0  ;;  %v386_v12 = vadd.s32 1, %v1683_v58  ;;  %v544_v20 = vor.u32 8388608, %v543_v61 }
  0xd0   : > { %v550_v2 = vand.u32 31, %v548_v0  ;;  %v495_v6 = vshll.u32 %v494_v62, 30  ;;  %v1698_v14 = vadd.f32 %v1621_v7, %v270_v16  ;;  %v383_v18 = vmul.u32 %v1627_v10, %v367_v63 }
  0xd1   : > { %vm385_vm12 = vc.u32 %v1688_v60, %v1682_v56  ;;  %v518_v9 = vsub.s32 4, %v494_v62  ;;  %v488_v10 = vadd.s32 %v1658_v5, %v1655_v3  ;;  %v1717_v31 = vshll.u32 %v544_v20, 8 }
  0xd2   : > { %v551_v22 = vsub.s32 32, %v550_v2  ;;  %v1703_v23 = vsub.s32 %v492_v42, %v495_v6  ;;  %v387_v1 = vsel %vm385_vm12, %v386_v12, %v1683_v58  ;;  %v640_v28 = vand.u32 2147483647, %v1698_v14 }
  0xd3   : > { %v388_v4 = vadd.s32 %v387_v1, %v383_v18  ;;  %v643_v32 = vand.u32 2139095040, %v1698_v14  ;;  %v1721_v38 = vshrl.u32 %v548_v0, 5  ;;  %v1727_v3 = vsel %vm434_vm13, %v518_v9, %v494_v62 }
  0xd4   : > { %v498_v27 = vsub.s32 0, %v1703_v23  ;;  %v554_v30 = vshrl.u32 %v1490_v17, %v551_v22  ;;  %v557_v46 = vshrl.u32 %v1491_v19, %v551_v22  ;;  %v560_v39 = vshrl.u32 %v1492_v21, %v551_v22 }
  0xd5   : > { %v389_v29 = vadd.s32 536870912, %v388_v4  ;;  %v553_v8 = vshll.u32 %v1489_v13, %v550_v2  ;;  %v563_v40 = vshrl.u32 %v1493_v24, %v551_v22  ;;  %v556_v15 = vshll.u32 %v1490_v17, %v550_v2 }
  0xd6   : > { %v1271_v37 = vmin.u32 %v498_v27, %v1703_v23  ;;  %v559_v42 = vshll.u32 %v1491_v19, %v550_v2  ;;  %v566_v45 = vshrl.u32 %v1494_v36, %v551_v22  ;;  %v562_v50 = vshll.u32 %v1492_v21, %v550_v2 }
  0xd7   : > { %v390_v5 = vshrl.u32 %v389_v29, 30  ;;  %v555_v49 = vor.u32 %v554_v30, %v553_v8  ;;  %v644_v51 = vshrl.u32 %v643_v32, 23  ;;  %v558_v53 = vor.u32 %v557_v46, %v556_v15 }
  0xd8   : > { %v500_v41 = vclz %v1271_v37  ;;  %v561_v54 = vor.u32 %v560_v39, %v559_v42  ;;  %v565_v55 = vshll.u32 %v1493_v24, %v550_v2  ;;  %v521_v58 = vsel %vm1709_vm14, 0, %v1727_v3 }
  0xd9   : > { %v391_v47 = vshll.u32 %v390_v5, 30  ;;  %v552_v61 = vshrl.u32 %v1489_v13, %v551_v22  ;;  %v564_v16 = vor.u32 %v563_v40, %v562_v50  ;;  %v414_v62 = vsub.s32 4, %v390_v5 }
  0xda   : > { %v1272_v52 = vadd.s32 4294967294, %v500_v41  ;;  %v567_v63 = vor.u32 %v566_v45, %v565_v55  ;;  %vm568_vm1 = vcmp.lt.s32.totalorder %v1721_v38, 1  ;;  %vm570_vm2 = vcmp.lt.s32.totalorder %v1721_v38, 3 }
  0xdb   : > { %v1740_v59 = vsub.s32 %v388_v4, %v391_v47  ;;  %vm571_vm3 = vcmp.lt.s32.totalorder %v1721_v38, 4  ;;  %vm1749_vm4 = vcmp.le.f32.partialorder %v328_v48, 0.7853982  ;;  %v576_v22 = vsel %vm568_vm1, %v555_v49, %v558_v53 }
  0xdc   : > { %vm1273_vm0 = vcmp.lt.s32.totalorder %v1272_v52, 0  ;;  %v573_v20 = vsel %vm571_vm3, %v561_v54, 2102212464  ;;  %v577_v4 = vsel %vm571_vm3, %v564_v16, 920167782  ;;  %v580_v27 = vsel %vm568_vm1, %v558_v53, %v561_v54 }
  0xdd   : > { %v503_v0 = vsel %vm1273_vm0, 0, %v1272_v52  ;;  %v394_v6 = vsub.s32 0, %v1740_v59  ;;  %v578_v48 = vsel %vm570_vm2, %v561_v54, %v577_v4  ;;  %v581_v32 = vsel %vm571_vm3, %v567_v63, 1326507024 }
  0xde   : > { %v504_v2 = vsub.s32 32, %v503_v0  ;;  %v508_v12 = vsub.s32 4294967266, %v503_v0  ;;  %v505_v1 = vshll.u32 %v1703_v23, %v503_v0  ;;  %vm569_vm5 = vcmp.lt.s32.totalorder %v1721_v38, 2 }
  0xdf   : > { %v1267_v9 = vmin.u32 %v394_v6, %v1740_v59  ;;  %v572_v46 = vsel %vm568_vm1, %v552_v61, %v555_v49  ;;  %v574_v23 = vsel %vm570_vm2, %v558_v53, %v573_v20  ;;  %v579_v8 = vsel %vm569_vm5, %v576_v22, %v578_v48 }
  0xe0   : > { %v506_v29 = vshrl.u32 %v488_v10, %v504_v2  ;;  %v509_v30 = vadd.s32 127, %v508_v12  ;;  %v582_v10 = vsel %vm570_vm2, %v564_v16, %v581_v32  ;;  %v415_v47 = vsel %vm330_vm15, %v414_v62, %v390_v5 }
  0xe1   : > { %v396_v37 = vclz %v1267_v9  ;;  %v583_v41 = vsel %vm569_vm5, %v580_v27, %v582_v10  ;;  %v1769_v15 = vmul.u32.u64.low %v1717_v31, %v579_v8  ;;  %v1770_v42 = vmul.u32.u64.high %v1717_v31, %v579_v8, %v1769_v15 }
  0xe2   : > { %v507_v39 = vor.u32 %v506_v29, %v505_v1  ;;  %v510_v3 = vshll.u32 %v509_v30, 23  ;;  %v1775_v49 = vmul.u32.u64.low %v1717_v31, %v583_v41  ;;  %v1776_v50 = vmul.u32.u64.high %v1717_v31, %v583_v41, %v1775_v49 }
  0xe3   : > { %v1268_v40 = vadd.s32 4294967294, %v396_v37  ;;  %v384_v52 = vadd.s32 %v1682_v56, %v1688_v60  ;;  %v575_v38 = vsel %vm569_vm5, %v572_v46, %v574_v23  ;;  %v1278_v53 = vadd.s32 4294967169, %v644_v51  ;;  %v293_v60 = vpop.permute.xlu1 %292  ;;  %v297_v37 = vpop.permute.xlu0 %296 }
  0xe4   : > { %v511_v45 = vor.u32 4788187, %v510_v3  ;;  %v514_v55 = vcvt.s32.f32 %v507_v39  ;;  %v525_v61 = vadd.s32 3, %v521_v58  ;;  %v417_v6 = vsel %vm1749_vm4, 0, %v415_v47 }
  0xe5   : > { %vm1269_vm6 = vcmp.lt.s32.totalorder %v1268_v40, 0  ;;  %v594_v5 = vadd.s32 1, %v1770_v42  ;;  %v591_v2 = vmul.u32 %v1717_v31, %v575_v38  ;;  %vm593_vm7 = vc.u32 %v1776_v50, %v1769_v15 }
  0xe6   : > { %v512_v54 = vand.u32 2147483647, %v511_v45  ;;  %v399_v16 = vsel %vm1269_vm6, 0, %v1268_v40  ;;  %v650_v56 = vadd.s32 1, %v1278_v53  ;;  %v647_v9 = vand.u32 8388607, %v640_v28 }
  0xe7   : > { %v400_v63 = vsub.s32 32, %v399_v16  ;;  %v404_v0 = vsub.s32 4294967266, %v399_v16  ;;  %v401_v51 = vshll.u32 %v1740_v59, %v399_v16  ;;  %v595_v58 = vsel %vm593_vm7, %v594_v5, %v1770_v42 }
  0xe8   : > { %v515_v62 = vmul.f32 %v514_v55, %v512_v54  ;;  %v596_v1 = vadd.s32 %v595_v58, %v591_v2  ;;  %vm651_vm8 = vcmp.gt.s32.totalorder %v650_v56, 0  ;;  %v315_v31 = vmul.f32 %v1589_v33, %v293_v60 }
  0xe9   : > { %v402_v12 = vshrl.u32 %v384_v52, %v400_v63  ;;  %v405_v20 = vadd.s32 127, %v404_v0  ;;  %v652_v29 = vsel %vm651_vm8, %v650_v56, 0  ;;  %v421_v48 = vadd.s32 3, %v417_v6 }
  0xea   : > { %v516_v22 = vxor.u32 2147483648, %v515_v62  ;;  %v597_v59 = vadd.s32 536870912, %v596_v1  ;;  %v654_v32 = vand.u32 31, %v652_v29  ;;  %v1795_v23 = vand.u32 3, %v525_v61 }
  0xeb   : > { %v403_v4 = vor.u32 %v402_v12, %v401_v51  ;;  %v406_v27 = vshll.u32 %v405_v20, 23  ;;  %v648_v8 = vor.u32 8388608, %v647_v9  ;;  %v1800_v42 = vmul.f32 %v1589_v33, %v297_v37 }
  0xec   : > { %v517_v30 = vsel %vm434_vm13, %v516_v22, %v515_v62  ;;  %v1797_v3 = vshrl.u32 %v597_v59, 30  ;;  %v655_v10 = vsub.s32 32, %v654_v32  ;;  %v1802_v45 = vand.u32 3, %v421_v48 }
  0xed   : > { %v520_v46 = vsel %vm1709_vm14, %v1601_v43, %v517_v30  ;;  %v407_v39 = vor.u32 4788187, %v406_v27  ;;  %v410_v41 = vcvt.s32.f32 %v403_v4  ;;  %v1807_v49 = vadd.f32 %v315_v31, %v1587_v26 }
  0xee   : > { %1390 = vcosq.f32 %v520_v46  ;;  %v599_v47 = vshll.u32 %v1797_v3, 30  ;;  %v658_v7 = vshrl.u32 %v1490_v17, %v655_v10  ;;  %v1810_v38 = vadd.s32 %v1769_v15, %v1776_v50 }
  0xef   : > { %1392 = vsinq.f32 %v520_v46  ;;  %v408_v40 = vand.u32 2147483647, %v407_v39  ;;  %v661_v53 = vshrl.u32 %v1491_v19, %v655_v10  ;;  %v664_v54 = vshrl.u32 %v1492_v21, %v655_v10 }
  0xf0   : > { %vm531_vm9 = vcmp.eq.s32.totalorder %v1795_v23, 2  ;;  %v1815_v55 = vsub.s32 %v596_v1, %v599_v47  ;;  %v657_v61 = vshll.u32 %v1489_v13, %v654_v32  ;;  %v667_v16 = vshrl.u32 %v1493_v24, %v655_v10  ;;  %v1872_v47 = vld [vmem:[%s2308_s3] ss:$0 sm:$0xff] }
  0xf1   : > { %v411_v52 = vmul.f32 %v410_v41, %v408_v40  ;;  %v1819_v63 = vshll.u32 %v648_v8, 8  ;;  %vm528_vm10 = vcmp.eq.s32.totalorder %v1795_v23, 0  ;;  %v1822_v0 = vshrl.u32 %v652_v29, 5 }
  0xf2   : > { %v660_v15 = vshll.u32 %v1490_v17, %v654_v32  ;;  %v663_v50 = vshll.u32 %v1491_v19, %v654_v32  ;;  %vm527_vm11 = vcmp.lt.s32.totalorder %v1795_v23, 2  ;;  %v602_v6 = vsub.s32 0, %v1815_v55 }
  0xf3   : > { %v412_v26 = vxor.u32 2147483648, %v411_v52  ;;  %v659_v5 = vor.u32 %v658_v7, %v657_v61  ;;  %v666_v62 = vshll.u32 %v1492_v21, %v654_v32  ;;  %v744_v2 = vand.u32 2147483647, %v1807_v49 }
  0xf4   : > { %vm524_vm12 = vweird.f32 %v1601_v43  ;;  %v662_v60 = vor.u32 %v661_v53, %v660_v15  ;;  %v665_v51 = vor.u32 %v664_v54, %v663_v50  ;;  %v670_v12 = vshrl.u32 %v1494_v36, %v655_v10 }
  0xf5   : > { %v413_v56 = vsel %vm330_vm15, %v412_v26, %v411_v52  ;;  %v1275_v58 = vmin.u32 %v602_v6, %v1815_v55  ;;  %v668_v22 = vor.u32 %v667_v16, %v666_v62  ;;  %v669_v1 = vshll.u32 %v1493_v24, %v654_v32 }
  0xf6   : > { %v416_v20 = vsel %vm1749_vm4, %v1603_v44, %v413_v56  ;;  %v622_v9 = vsub.s32 4, %v1797_v3  ;;  %v656_v4 = vshrl.u32 %v1489_v13, %v655_v10  ;;  %vm672_vm13 = vcmp.lt.s32.totalorder %v1822_v0, 1 }
  0xf7   : > { %1394 = vcosq.f32 %v416_v20  ;;  %vm538_vm14 = vcmp.lt.s32.totalorder %v1615_v57, 0  ;;  %v604_v18 = vclz %v1275_v58  ;;  %v671_v29 = vor.u32 %v670_v12, %v669_v1 }
  0xf8   : > { %v1391_v27 = vpop.eup %1390  ;;  %1396 = vsinq.f32 %v416_v20  ;;  %vm673_vm15 = vcmp.lt.s32.totalorder %v1822_v0, 2  ;;  %vm674_vm0 = vcmp.lt.s32.totalorder %v1822_v0, 3  ;;  %vm675_vm1 = vcmp.lt.s32.totalorder %v1822_v0, 4 }
  0xf9   : > { %v1393_v31 = vpop.eup %1392  ;;  %v532_v30 = vxor.u32 2147483648, %v1391_v27  ;;  %v680_v48 = vsel %vm672_vm13, %v659_v5, %v662_v60  ;;  %v1276_v32 = vadd.s32 4294967294, %v604_v18  ;;  %v677_v37 = vsel %vm675_vm1, %v665_v51, 2102212464 }
  0xfa   : > { %v529_v59 = vxor.u32 2147483648, %v1393_v31  ;;  %v681_v46 = vsel %vm675_vm1, %v668_v22, 920167782  ;;  %vm1859_vm2 = vcmp.le.f32.partialorder %v536_v11, 0.7853982  ;;  %v676_v10 = vsel %vm672_vm13, %v656_v4, %v659_v5 }
  0xfb   : > { %v533_v39 = vsel %vm531_vm9, %v532_v30, %v1393_v31  ;;  %v682_v40 = vsel %vm674_vm0, %v665_v51, %v681_v46  ;;  %v684_v41 = vsel %vm672_vm13, %v662_v60, %v665_v51  ;;  %vm1277_vm3 = vcmp.lt.s32.totalorder %v1276_v32, 0 }
  0xfc   : > { %v530_v11 = vsel %vm528_vm10, %v1391_v27, %v529_v59  ;;  %v683_v7 = vsel %vm673_vm15, %v680_v48, %v682_v40  ;;  %v685_v52 = vsel %vm675_vm1, %v671_v29, 1326507024  ;;  %vm423_vm4 = vcmp.lt.s32.totalorder %v1802_v45, 2 }
  0xfd   : > { %v534_v53 = vsel %vm527_vm11, %v530_v11, %v533_v39  ;;  %v607_v54 = vsel %vm1277_vm3, 0, %v1276_v32  ;;  %v678_v61 = vsel %vm674_vm0, %v662_v60, %v677_v37  ;;  %v686_v16 = vsel %vm674_vm0, %v668_v22, %v685_v52 }
  0xfe   : > { %v535_v26 = vsel %vm524_vm12, nan, %v534_v53  ;;  %vm420_vm5 = vweird.f32 %v1603_v44  ;;  %v608_v15 = vsub.s32 32, %v607_v54  ;;  %v609_v50 = vshll.u32 %v1815_v55, %v607_v54 }
  0xff   : > { %v612_v6 = vsub.s32 4294967266, %v607_v54  ;;  %v1167_v23 = vmul.f32 %v1872_v47, %v535_v26  ;;  %v687_v5 = vsel %vm673_vm15, %v684_v41, %v686_v16  ;;  %vm424_vm6 = vcmp.eq.s32.totalorder %v1802_v45, 0 }
 0x100   : > { %v1895_v62 = vmul.u32.u64.low %v1819_v63, %v683_v7  ;;  %v1896_v56 = vmul.u32.u64.high %v1819_v63, %v683_v7, %v1895_v62  ;;  %v610_v60 = vshrl.u32 %v1810_v38, %v608_v15  ;;  %vm427_vm7 = vcmp.eq.s32.totalorder %v1802_v45, 2 }
 0x101   : > { %v613_v51 = vadd.s32 127, %v612_v6  ;;  %v1900_v43 = vmul.u32.u64.low %v1819_v63, %v687_v5  ;;  %v1901_v12 = vmul.u32.u64.high %v1819_v63, %v687_v5, %v1900_v43  ;;  %v1395_v20 = vpop.eup %1394  ;;  %1175 = vst [vmem:[%s1903_s14 + $0x8] sm:$0xff] %v1167_v23  ;;  %v623_v55 = vsel %vm538_vm14, %v622_v9, %v1797_v3 }
 0x102   : > { %v747_v38 = vand.u32 2139095040, %v1807_v49  ;;  %v1397_v58 = vpop.eup %1396  ;;  %v428_v22 = vxor.u32 2147483648, %v1395_v20  ;;  %v611_v1 = vor.u32 %v610_v60, %v609_v50  ;;  %v679_v27 = vsel %vm673_vm15, %v676_v10, %v678_v61 }
 0x103   : > { %v614_v4 = vshll.u32 %v613_v51, 23  ;;  %v425_v18 = vxor.u32 2147483648, %v1397_v58  ;;  %v698_v29 = vadd.s32 1, %v1896_v56  ;;  %v1917_v30 = vadd.f32 %v1800_v42, %v1584_v25 }
 0x104   : > { %v748_v31 = vshrl.u32 %v747_v38, 23  ;;  %v429_v48 = vsel %vm427_vm7, %v428_v22, %v1397_v58  ;;  %v625_v3 = vsel %vm1859_vm2, 0, %v623_v55  ;;  %v751_v9 = vand.u32 8388607, %v744_v2  ;;  %v301_v58 = vpop.permute.xlu1 %300 }
 0x105   : > { %v615_v59 = vor.u32 4788187, %v614_v4  ;;  %v426_v0 = vsel %vm424_vm6, %v1395_v20, %v425_v18  ;;  %v695_v32 = vmul.u32 %v1819_v63, %v679_v27  ;;  %vm697_vm8 = vc.u32 %v1901_v12, %v1895_v62 }
 0x106   : > { %v1282_v37 = vadd.s32 4294967169, %v748_v31  ;;  %v430_v25 = vsel %vm423_vm4, %v426_v0, %v429_v48  ;;  %v618_v46 = vcvt.s32.f32 %v611_v1  ;;  %v699_v39 = vsel %vm697_vm8, %v698_v29, %v1896_v56 }
 0x107   : > { %v616_v42 = vand.u32 2147483647, %v615_v59  ;;  %v431_v10 = vsel %vm420_vm5, nan, %v430_v25  ;;  %v700_v40 = vadd.s32 %v699_v39, %v695_v32  ;;  %v629_v63 = vadd.s32 3, %v625_v3 }
 0x108   : > { %v754_v41 = vadd.s32 1, %v1282_v37  ;;  %v1166_v11 = vmul.f32 %v1872_v47, %v431_v10  ;;  %v752_v52 = vor.u32 8388608, %v751_v9  ;;  %v848_v61 = vand.u32 2147483647, %v1917_v30 }
 0x109   : > { %v619_v7 = vmul.f32 %v618_v46, %v616_v42  ;;  %v701_v53 = vadd.s32 536870912, %v700_v40  ;;  %v851_v16 = vand.u32 2139095040, %v1917_v30  ;;  %vm1938_vm10 = vcmp.le.f32.partialorder %v640_v28, 0.7853982 }
 0x10a   : > { %vm755_vm9 = vcmp.gt.s32.totalorder %v754_v41, 0  ;;  %1174 = vst [vmem:[%s1903_s14] sm:$0xff] %v1166_v11  ;;  %vm642_vm11 = vcmp.lt.s32.totalorder %v1698_v14, 0  ;;  %v1945_v6 = vand.u32 3, %v629_v63  ;;  %v1948_v23 = vadd.s32 %v1895_v62, %v1901_v12 }
 0x10b   : > { %v620_v54 = vxor.u32 2147483648, %v619_v7  ;;  %v756_v45 = vsel %vm755_vm9, %v754_v41, 0  ;;  %v702_v26 = vshrl.u32 %v701_v53, 30  ;;  %v1950_v5 = vshll.u32 %v752_v52, 8 }
 0x10c   : > { %v758_v15 = vand.u32 31, %v756_v45  ;;  %v757_v43 = vshrl.u32 %v756_v45, 5  ;;  %v852_v20 = vshrl.u32 %v851_v16, 23  ;;  %v1957_v55 = vand.u32 8388607, %v848_v61 }
 0x10d   : > { %v621_v50 = vsel %vm538_vm14, %v620_v54, %v619_v7  ;;  %v703_v56 = vshll.u32 %v702_v26, 30  ;;  %v726_v60 = vsub.s32 4, %v702_v26  ;;  %vm635_vm12 = vcmp.eq.s32.totalorder %v1945_v6, 2 }
 0x10e   : > { %v624_v28 = vsel %vm1859_vm2, %v1615_v57, %v621_v50  ;;  %v759_v51 = vsub.s32 32, %v758_v15  ;;  %v761_v62 = vshll.u32 %v1489_v13, %v758_v15  ;;  %v764_v12 = vshll.u32 %v1490_v17, %v758_v15 }
 0x10f   : > { %1398 = vcosq.f32 %v624_v28  ;;  %v1959_v38 = vsub.s32 %v700_v40, %v703_v56  ;;  %v767_v1 = vshll.u32 %v1491_v19, %v758_v15  ;;  %v1970_v18 = vsel %vm642_vm11, %v726_v60, %v702_v26 }
 0x110   : > { %1400 = vsinq.f32 %v624_v28  ;;  %v762_v8 = vshrl.u32 %v1490_v17, %v759_v51  ;;  %v765_v22 = vshrl.u32 %v1491_v19, %v759_v51  ;;  %v768_v4 = vshrl.u32 %v1492_v21, %v759_v51 }
 0x111   : > { %v706_v27 = vsub.s32 0, %v1959_v38  ;;  %v770_v29 = vshll.u32 %v1492_v21, %v758_v15  ;;  %v771_v31 = vshrl.u32 %v1493_v24, %v759_v51  ;;  %v317_v9 = vmul.f32 %v1589_v33, %v301_v58 }
 0x112   : > { %v763_v48 = vor.u32 %v762_v8, %v761_v62  ;;  %v766_v59 = vor.u32 %v765_v22, %v764_v12  ;;  %v769_v3 = vor.u32 %v768_v4, %v767_v1  ;;  %vm632_vm13 = vcmp.eq.s32.totalorder %v1945_v6, 0 }
 0x113   : > { %v1279_v0 = vmin.u32 %v706_v27, %v1959_v38  ;;  %v772_v32 = vor.u32 %v771_v31, %v770_v29  ;;  %v774_v37 = vshrl.u32 %v1494_v36, %v759_v51  ;;  %v856_v25 = vor.u32 8388608, %v1957_v55 }
 0x114   : > { %vm631_vm14 = vcmp.lt.s32.totalorder %v1945_v6, 2  ;;  %v729_v42 = vsel %vm1938_vm10, 0, %v1970_v18  ;;  %v760_v46 = vshrl.u32 %v1489_v13, %v759_v51  ;;  %v773_v39 = vshll.u32 %v1493_v24, %v758_v15 }
 0x115   : > { %v1286_v10 = vadd.s32 4294967169, %v852_v20  ;;  %vm628_vm15 = vweird.f32 %v1615_v57  ;;  %v708_v40 = vclz %v1279_v0  ;;  %vm776_vm0 = vcmp.lt.s32.totalorder %v757_v43, 1 }
 0x116   : > { %vm778_vm1 = vcmp.lt.s32.totalorder %v757_v43, 3  ;;  %vm779_vm2 = vcmp.lt.s32.totalorder %v757_v43, 4  ;;  %v775_v41 = vor.u32 %v774_v37, %v773_v39  ;;  %v780_v11 = vsel %vm776_vm0, %v760_v46, %v763_v48 }
 0x117   : > { %v781_v7 = vsel %vm779_vm2, %v769_v3, 2102212464  ;;  %v784_v63 = vsel %vm776_vm0, %v763_v48, %v766_v59  ;;  %v1280_v52 = vadd.s32 4294967294, %v708_v40  ;;  %v785_v54 = vsel %vm779_vm2, %v772_v32, 920167782 }
 0x118   : > { %v782_v53 = vsel %vm778_vm1, %v766_v59, %v781_v7  ;;  %v788_v45 = vsel %vm776_vm0, %v766_v59, %v769_v3  ;;  %vm777_vm3 = vcmp.lt.s32.totalorder %v757_v43, 2  ;;  %v786_v26 = vsel %vm778_vm1, %v769_v3, %v785_v54 }
 0x119   : > { %v1399_v16 = vpop.eup %1398  ;;  %v789_v15 = vsel %vm779_vm2, %v775_v41, 1326507024  ;;  %v858_v50 = vadd.s32 1, %v1286_v10  ;;  %vm1281_vm4 = vcmp.lt.s32.totalorder %v1280_v52, 0  ;;  %v783_v60 = vsel %vm777_vm3, %v780_v11, %v782_v53 }
 0x11a   : > { %v1401_v28 = vpop.eup %1400  ;;  %v636_v56 = vxor.u32 2147483648, %v1399_v16  ;;  %v790_v51 = vsel %vm778_vm1, %v772_v32, %v789_v15  ;;  %v711_v55 = vsel %vm1281_vm4, 0, %v1280_v52  ;;  %v787_v62 = vsel %vm777_vm3, %v784_v63, %v786_v26 }
 0x11b   : > { %v633_v20 = vxor.u32 2147483648, %v1401_v28  ;;  %v791_v12 = vsel %vm777_vm3, %v788_v45, %v790_v51  ;;  %v712_v8 = vsub.s32 32, %v711_v55  ;;  %v713_v22 = vshll.u32 %v1959_v38, %v711_v55 }
 0x11c   : > { %v637_v58 = vsel %vm635_vm12, %v636_v56, %v1401_v28  ;;  %v716_v1 = vsub.s32 4294967266, %v711_v55  ;;  %v1996_v27 = vmul.u32.u64.low %v1950_v5, %v791_v12  ;;  %v1997_v18 = vmul.u32.u64.high %v1950_v5, %v791_v12, %v1996_v27 }
 0x11d   : > { %v634_v4 = vsel %vm632_vm13, %v1399_v16, %v633_v20  ;;  %vm859_vm5 = vcmp.gt.s32.totalorder %v858_v50, 0  ;;  %v714_v29 = vshrl.u32 %v1948_v23, %v712_v8  ;;  %v733_v39 = vadd.s32 3, %v729_v42 }
 0x11e   : > { %v638_v43 = vsel %vm631_vm14, %v634_v4, %v637_v58  ;;  %v717_v31 = vadd.s32 127, %v716_v1  ;;  %v860_v48 = vsel %vm859_vm5, %v858_v50, 0  ;;  %v799_v6 = vmul.u32 %v1950_v5, %v783_v60 }
 0x11f   : > { %v639_v38 = vsel %vm628_vm15, nan, %v638_v43  ;;  %v2005_v59 = vmul.u32.u64.low %v1950_v5, %v787_v62  ;;  %v2006_v3 = vmul.u32.u64.high %v1950_v5, %v787_v62, %v2005_v59  ;;  %v715_v32 = vor.u32 %v714_v29, %v713_v22 }
 0x120   : > { %v1168_v0 = vmul.f32 %v1872_v47, %v639_v38  ;;  %v718_v37 = vshll.u32 %v717_v31, 23  ;;  %v862_v46 = vand.u32 31, %v860_v48  ;;  %v2011_v10 = vshll.u32 %v856_v25, 8 }
 0x121   : > { %v2014_v23 = vadd.f32 %v317_v9, %v1595_v35  ;;  %vm801_vm6 = vc.u32 %v1997_v18, %v2005_v59  ;;  %v861_v40 = vshrl.u32 %v860_v48, 5  ;;  %v722_v11 = vcvt.s32.f32 %v715_v32 }
 0x122   : > { %1176 = vst [vmem:[%s1903_s14 + $0x10] sm:$0xff] %v1168_v0  ;;  %v719_v57 = vor.u32 4788187, %v718_v37  ;;  %v863_v41 = vsub.s32 32, %v862_v46  ;;  %v802_v7 = vadd.s32 1, %v2006_v3  ;;  %v865_v63 = vshll.u32 %v1489_v13, %v862_v46 }
 0x123   : > { %v868_v42 = vshll.u32 %v1490_v17, %v862_v46  ;;  %v871_v9 = vshll.u32 %v1491_v19, %v862_v46  ;;  %v874_v54 = vshll.u32 %v1492_v21, %v862_v46  ;;  %v877_v60 = vshll.u32 %v1493_v24, %v862_v46 }
 0x124   : > { %v720_v5 = vand.u32 2147483647, %v719_v57  ;;  %v866_v25 = vshrl.u32 %v1490_v17, %v863_v41  ;;  %v869_v35 = vshrl.u32 %v1491_v19, %v863_v41  ;;  %v803_v52 = vsel %vm801_vm6, %v802_v7, %v2006_v3  ;;  %v305_v57 = vpop.permute.xlu0 %304 }
 0x125   : > { %v872_v53 = vshrl.u32 %v1492_v21, %v863_v41  ;;  %v875_v45 = vshrl.u32 %v1493_v24, %v863_v41  ;;  %v804_v26 = vadd.s32 %v803_v52, %v799_v6  ;;  %v878_v51 = vshrl.u32 %v1494_v36, %v863_v41 }
 0x126   : > { %v723_v16 = vmul.f32 %v722_v11, %v720_v5  ;;  %v867_v15 = vor.u32 %v866_v25, %v865_v63  ;;  %v870_v50 = vor.u32 %v869_v35, %v868_v42  ;;  %vm880_vm7 = vcmp.lt.s32.totalorder %v861_v40, 1 }
 0x127   : > { %v873_v28 = vor.u32 %v872_v53, %v871_v9  ;;  %v876_v56 = vor.u32 %v875_v45, %v874_v54  ;;  %v805_v55 = vadd.s32 536870912, %v804_v26  ;;  %vm883_vm8 = vcmp.lt.s32.totalorder %v861_v40, 4 }
 0x128   : > { %v724_v20 = vxor.u32 2147483648, %v723_v16  ;;  %v879_v62 = vor.u32 %v878_v51, %v877_v60  ;;  %vm882_vm9 = vcmp.lt.s32.totalorder %v861_v40, 3  ;;  %v888_v12 = vsel %vm880_vm7, %v867_v15, %v870_v50 }
 0x129   : > { %v889_v58 = vsel %vm883_vm8, %v876_v56, 920167782  ;;  %v806_v22 = vshrl.u32 %v805_v55, 30  ;;  %vm881_vm12 = vcmp.lt.s32.totalorder %v861_v40, 2  ;;  %v885_v27 = vsel %vm883_vm8, %v873_v28, 2102212464 }
 0x12a   : > { %v725_v8 = vsel %vm642_vm11, %v724_v20, %v723_v16  ;;  %v890_v1 = vsel %vm882_vm9, %v873_v28, %v889_v58  ;;  %v892_v29 = vsel %vm880_vm7, %v870_v50, %v873_v28  ;;  %v864_v48 = vshrl.u32 %v1489_v13, %v863_v41 }
 0x12b   : > { %v728_v4 = vsel %vm1938_vm10, %v1698_v14, %v725_v8  ;;  %v891_v43 = vsel %vm881_vm12, %v888_v12, %v890_v1  ;;  %v807_v31 = vshll.u32 %v806_v22, 30  ;;  %v893_v38 = vsel %vm883_vm8, %v879_v62, 1326507024 }
 0x12c   : > { %1402 = vcosq.f32 %v728_v4  ;;  %v894_v3 = vsel %vm882_vm9, %v876_v56, %v893_v38  ;;  %v2046_v0 = vmul.u32.u64.low %v2011_v10, %v891_v43  ;;  %v2047_v32 = vmul.u32.u64.high %v2011_v10, %v891_v43, %v2046_v0 }
 0x12d   : > { %1404 = vsinq.f32 %v728_v4  ;;  %v2050_v44 = vsub.s32 %v804_v26, %v807_v31  ;;  %v884_v37 = vsel %vm880_vm7, %v864_v48, %v867_v15  ;;  %v886_v46 = vsel %vm882_vm9, %v870_v50, %v885_v27 }
 0x12e   : > { %v895_v6 = vsel %vm881_vm12, %v892_v29, %v894_v3  ;;  %v830_v41 = vsub.s32 4, %v806_v22  ;;  %v955_v42 = vand.u32 2139095040, %v2014_v23  ;;  %v734_v5 = vand.u32 3, %v733_v39 }
 0x12f   : > { %v2056_v11 = vmul.u32.u64.low %v2011_v10, %v895_v6  ;;  %v2057_v7 = vmul.u32.u64.high %v2011_v10, %v895_v6, %v2056_v11  ;;  %v810_v63 = vsub.s32 0, %v2050_v44  ;;  %v887_v25 = vsel %vm881_vm12, %v884_v37, %v886_v46 }
 0x130   : > { %v906_v35 = vadd.s32 1, %v2047_v32  ;;  %v318_v9 = vmul.f32 %v1589_v33, %v305_v57  ;;  %vm746_vm10 = vcmp.lt.s32.totalorder %v1807_v49, 0  ;;  %v952_v53 = vand.u32 2147483647, %v2014_v23 }
 0x131   : > { %v1283_v52 = vmin.u32 %v810_v63, %v2050_v44  ;;  %v956_v54 = vshrl.u32 %v955_v42, 23  ;;  %v831_v45 = vsel %vm746_vm10, %v830_v41, %v806_v22  ;;  %vm905_vm11 = vc.u32 %v2057_v7, %v2046_v0 }
 0x132   : > { %vm732_vm13 = vweird.f32 %v1698_v14  ;;  %vm2074_vm14 = vcmp.le.f32.partialorder %v744_v2, 0.7853982  ;;  %v903_v40 = vmul.u32 %v2011_v10, %v887_v25  ;;  %vm735_vm15 = vcmp.lt.s32.totalorder %v734_v5, 2 }
 0x133   : > { %v812_v33 = vclz %v1283_v52  ;;  %v907_v16 = vsel %vm905_vm11, %v906_v35, %v2047_v32  ;;  %v1290_v26 = vadd.s32 4294967169, %v956_v54  ;;  %v2081_v15 = vadd.f32 %v318_v9, %v1592_v34 }
 0x134   : > { %v833_v56 = vsel %vm2074_vm14, 0, %v831_v45  ;;  %v908_v60 = vadd.s32 %v907_v16, %v903_v40  ;;  %v959_v2 = vand.u32 8388607, %v952_v53  ;;  %vm736_vm0 = vcmp.eq.s32.totalorder %v734_v5, 0 }
 0x135   : > { %v1284_v28 = vadd.s32 4294967294, %v812_v33  ;;  %vm739_vm1 = vcmp.eq.s32.totalorder %v734_v5, 2  ;;  %v962_v20 = vadd.s32 1, %v1290_v26  ;;  %v800_v62 = vadd.s32 %v2005_v59, %v1997_v18 }
 0x136   : > { %v1403_v50 = vpop.eup %1402  ;;  %v909_v34 = vadd.s32 536870912, %v908_v60  ;;  %v837_v8 = vadd.s32 3, %v833_v56  ;;  %v960_v27 = vor.u32 8388608, %v959_v2  ;;  %v1059_v48 = vand.u32 2139095040, %v2081_v15 }
 0x137   : > { %v1405_v51 = vpop.eup %1404  ;;  %v740_v10 = vxor.u32 2147483648, %v1403_v50  ;;  %vm1285_vm2 = vcmp.lt.s32.totalorder %v1284_v28, 0  ;;  %vm963_vm3 = vcmp.gt.s32.totalorder %v962_v20, 0  ;;  %v904_v14 = vadd.s32 %v2046_v0, %v2057_v7 }
 0x138   : > { %v737_v55 = vxor.u32 2147483648, %v1405_v51  ;;  %v815_v58 = vsel %vm1285_vm2, 0, %v1284_v28  ;;  %v2090_v29 = vshrl.u32 %v909_v34, 30  ;;  %v964_v31 = vsel %vm963_vm3, %v962_v20, 0 }
 0x139   : > { %v741_v12 = vsel %vm739_vm1, %v740_v10, %v1405_v51  ;;  %v816_v1 = vsub.s32 32, %v815_v58  ;;  %v820_v4 = vsub.s32 4294967266, %v815_v58  ;;  %v817_v59 = vshll.u32 %v2050_v44, %v815_v58 }
 0x13a   : > { %v738_v22 = vsel %vm736_vm0, %v1403_v50, %v737_v55  ;;  %v911_v37 = vshll.u32 %v2090_v29, 30  ;;  %v966_v46 = vand.u32 31, %v964_v31  ;;  %v1060_v63 = vshrl.u32 %v1059_v48, 23 }
 0x13b   : > { %v742_v43 = vsel %vm735_vm15, %v738_v22, %v741_v12  ;;  %v818_v38 = vshrl.u32 %v800_v62, %v816_v1  ;;  %v821_v3 = vadd.s32 127, %v820_v4  ;;  %v2101_v5 = vand.u32 3, %v837_v8 }
 0x13c   : > { %v743_v18 = vsel %vm732_vm13, nan, %v742_v43  ;;  %v2099_v41 = vsub.s32 %v908_v60, %v911_v37  ;;  %v967_v11 = vsub.s32 32, %v966_v46  ;;  %v2105_v44 = vshll.u32 %v960_v27, 8 }
 0x13d   : > { %v1169_v32 = vmul.f32 %v1872_v47, %v743_v18  ;;  %v819_v6 = vor.u32 %v818_v38, %v817_v59  ;;  %v822_v57 = vshll.u32 %v821_v3, 23  ;;  %v965_v9 = vshrl.u32 %v964_v31, 5 }
 0x13e   : > { %v914_v35 = vsub.s32 0, %v2099_v41  ;;  %v970_v52 = vshrl.u32 %v1490_v17, %v967_v11  ;;  %v973_v45 = vshrl.u32 %v1491_v19, %v967_v11  ;;  %v975_v33 = vshll.u32 %v1491_v19, %v966_v46 }
 0x13f   : > { %1177 = vst [vmem:[%s1903_s14 + $0x18] sm:$0xff] %v1169_v32  ;;  %v823_v42 = vor.u32 4788187, %v822_v57  ;;  %v826_v25 = vcvt.s32.f32 %v819_v6  ;;  %v976_v40 = vshrl.u32 %v1492_v21, %v967_v11  ;;  %v969_v26 = vshll.u32 %v1489_v13, %v966_v46 }
 0x140   : > { %v1287_v16 = vmin.u32 %v914_v35, %v2099_v41  ;;  %v972_v0 = vshll.u32 %v1490_v17, %v966_v46  ;;  %v1294_v7 = vadd.s32 4294967169, %v1060_v63  ;;  %v978_v56 = vshll.u32 %v1492_v21, %v966_v46 }
 0x141   : > { %v824_v54 = vand.u32 2147483647, %v823_v42  ;;  %v977_v28 = vor.u32 %v976_v40, %v975_v33  ;;  %v979_v60 = vshrl.u32 %v1493_v24, %v967_v11  ;;  %v971_v51 = vor.u32 %v970_v52, %v969_v26 }
 0x142   : > { %v916_v2 = vclz %v1287_v16  ;;  %v974_v10 = vor.u32 %v973_v45, %v972_v0  ;;  %vm984_vm4 = vcmp.lt.s32.totalorder %v965_v9, 1  ;;  %v981_v62 = vshll.u32 %v1493_v24, %v966_v46 }
 0x143   : > { %v827_v50 = vmul.f32 %v826_v25, %v824_v54  ;;  %v980_v55 = vor.u32 %v979_v60, %v978_v56  ;;  %v982_v34 = vshrl.u32 %v1494_v36, %v967_v11  ;;  %v968_v58 = vshrl.u32 %v1489_v13, %v967_v11 }
 0x144   : > { %v1288_v12 = vadd.s32 4294967294, %v916_v2  ;;  %vm985_vm5 = vcmp.lt.s32.totalorder %v965_v9, 2  ;;  %vm987_vm6 = vcmp.lt.s32.totalorder %v965_v9, 4  ;;  %vm986_vm7 = vcmp.lt.s32.totalorder %v965_v9, 3 }
 0x145   : > { %v828_v20 = vxor.u32 2147483648, %v827_v50  ;;  %v983_v22 = vor.u32 %v982_v34, %v981_v62  ;;  %v989_v1 = vsel %vm987_vm6, %v977_v28, 2102212464  ;;  %v992_v27 = vsel %vm984_vm4, %v971_v51, %v974_v10 }
 0x146   : > { %vm1289_vm8 = vcmp.lt.s32.totalorder %v1288_v12, 0  ;;  %v993_v43 = vsel %vm987_vm6, %v980_v55, 920167782  ;;  %v988_v48 = vsel %vm984_vm4, %v968_v58, %v971_v51  ;;  %v990_v3 = vsel %vm986_vm7, %v974_v10, %v989_v1 }
 0x147   : > { %v829_v8 = vsel %vm746_vm10, %v828_v20, %v827_v50  ;;  %v919_v31 = vsel %vm1289_vm8, 0, %v1288_v12  ;;  %v994_v18 = vsel %vm986_vm7, %v977_v28, %v993_v43  ;;  %v996_v37 = vsel %vm984_vm4, %v974_v10, %v977_v28 }
 0x148   : > { %v832_v4 = vsel %vm2074_vm14, %v1807_v49, %v829_v8  ;;  %v920_v59 = vsub.s32 32, %v919_v31  ;;  %v924_v38 = vsub.s32 4294967266, %v919_v31  ;;  %v921_v32 = vshll.u32 %v2099_v41, %v919_v31 }
 0x149   : > { %1406 = vcosq.f32 %v832_v4  ;;  %v995_v39 = vsel %vm985_vm5, %v992_v27, %v994_v18  ;;  %v997_v46 = vsel %vm987_vm6, %v983_v22, 1326507024  ;;  %v1066_v63 = vadd.s32 1, %v1294_v7 }
 0x14a   : > { %1408 = vsinq.f32 %v832_v4  ;;  %v922_v6 = vshrl.u32 %v904_v14, %v920_v59  ;;  %v925_v57 = vadd.s32 127, %v924_v38  ;;  %v998_v11 = vsel %vm986_vm7, %v980_v55, %v997_v46 }
 0x14b   : > { %v934_v42 = vsub.s32 4, %v2090_v29  ;;  %v999_v25 = vsel %vm985_vm5, %v996_v37, %v998_v11  ;;  %v2139_v35 = vmul.u32.u64.low %v2105_v44, %v995_v39  ;;  %v2140_v52 = vmul.u32.u64.high %v2105_v44, %v995_v39, %v2139_v35 }
 0x14c   : > { %v923_v41 = vor.u32 %v922_v6, %v921_v32  ;;  %v926_v54 = vshll.u32 %v925_v57, 23  ;;  %v2144_v45 = vmul.u32.u64.low %v2105_v44, %v999_v25  ;;  %v2145_v33 = vmul.u32.u64.high %v2105_v44, %v999_v25, %v2144_v45 }
 0x14d   : > { %vm850_vm9 = vcmp.lt.s32.totalorder %v1917_v30, 0  ;;  %v991_v14 = vsel %vm985_vm5, %v988_v48, %v990_v3  ;;  %v1056_v40 = vand.u32 2147483647, %v2081_v15  ;;  %vm1067_vm12 = vcmp.gt.s32.totalorder %v1066_v63, 0 }
 0x14e   : > { %vm836_vm10 = vweird.f32 %v1807_v49  ;;  %vm839_vm11 = vcmp.lt.s32.totalorder %v2101_v5, 2  ;;  %vm2154_vm13 = vcmp.le.f32.partialorder %v848_v61, 0.7853982  ;;  %v927_v26 = vor.u32 4788187, %v926_v54 }
 0x14f   : > { %v1068_v0 = vsel %vm1067_vm12, %v1066_v63, 0  ;;  %vm840_vm14 = vcmp.eq.s32.totalorder %v2101_v5, 0  ;;  %v935_v9 = vsel %vm850_vm9, %v934_v42, %v2090_v29  ;;  %v1010_v7 = vadd.s32 1, %v2140_v52 }
 0x150   : > { %v1070_v50 = vand.u32 31, %v1068_v0  ;;  %v928_v28 = vand.u32 2147483647, %v927_v26  ;;  %v930_v56 = vcvt.s32.f32 %v923_v41  ;;  %v1007_v60 = vmul.u32 %v2105_v44, %v991_v14 }
 0x151   : > { %vm1009_vm15 = vc.u32 %v2145_v33, %v2139_v35  ;;  %vm843_vm0 = vcmp.eq.s32.totalorder %v2101_v5, 2  ;;  %v1063_v51 = vand.u32 8388607, %v1056_v40  ;;  %v937_v62 = vsel %vm2154_vm13, 0, %v935_v9 }
 0x152   : > { %v1011_v2 = vsel %vm1009_vm15, %v1010_v7, %v2140_v52  ;;  %v1071_v10 = vsub.s32 32, %v1070_v50  ;;  %v931_v55 = vmul.f32 %v930_v56, %v928_v28  ;;  %v2172_v12 = vshrl.u32 %v1068_v0, 5 }
 0x153   : > { %v1407_v61 = vpop.eup %1406  ;;  %v1012_v34 = vadd.s32 %v1011_v2, %v1007_v60  ;;  %v1073_v58 = vshll.u32 %v1489_v13, %v1070_v50  ;;  %v1076_v31 = vshll.u32 %v1490_v17, %v1070_v50  ;;  %v1079_v48 = vshll.u32 %v1491_v19, %v1070_v50 }
 0x154   : > { %v1409_v29 = vpop.eup %1408  ;;  %v844_v20 = vxor.u32 2147483648, %v1407_v61  ;;  %v1074_v8 = vshrl.u32 %v1490_v17, %v1071_v10  ;;  %v932_v1 = vxor.u32 2147483648, %v931_v55  ;;  %v1077_v27 = vshrl.u32 %v1491_v19, %v1071_v10 }
 0x155   : > { %v841_v44 = vxor.u32 2147483648, %v1409_v29  ;;  %v1013_v4 = vadd.s32 536870912, %v1012_v34  ;;  %v1080_v18 = vshrl.u32 %v1492_v21, %v1071_v10  ;;  %v1082_v19 = vshll.u32 %v1492_v21, %v1070_v50 }
 0x156   : > { %v845_v22 = vsel %vm843_vm0, %v844_v20, %v1409_v29  ;;  %v933_v38 = vsel %vm850_vm9, %v932_v1, %v931_v55  ;;  %v1075_v32 = vor.u32 %v1074_v8, %v1073_v58  ;;  %v1083_v37 = vshrl.u32 %v1493_v24, %v1071_v10 }
 0x157   : > { %v842_v43 = vsel %vm840_vm14, %v1407_v61, %v841_v44  ;;  %v2186_v3 = vshrl.u32 %v1013_v4, 30  ;;  %v936_v17 = vsel %vm2154_vm13, %v1917_v30, %v933_v38  ;;  %v1078_v6 = vor.u32 %v1077_v27, %v1076_v31 }
 0x158   : > { %v846_v59 = vsel %vm839_vm11, %v842_v43, %v845_v22  ;;  %1410 = vcosq.f32 %v936_v17  ;;  %v1084_v57 = vor.u32 %v1083_v37, %v1082_v19  ;;  %v1085_v11 = vshll.u32 %v1493_v24, %v1070_v50 }
 0x159   : > { %v847_v39 = vsel %vm836_vm10, nan, %v846_v59  ;;  %v1015_v46 = vshll.u32 %v2186_v3, 30  ;;  %1412 = vsinq.f32 %v936_v17  ;;  %v1086_v49 = vshrl.u32 %v1494_v36, %v1071_v10 }
 0x15a   : > { %v1170_v5 = vmul.f32 %v1872_v47, %v847_v39  ;;  %v1081_v42 = vor.u32 %v1080_v18, %v1079_v48  ;;  %v941_v25 = vadd.s32 3, %v937_v62  ;;  %v1064_v52 = vor.u32 8388608, %v1063_v51 }
 0x15b   : > { %v1016_v63 = vsub.s32 %v1012_v34, %v1015_v46  ;;  %v1087_v21 = vor.u32 %v1086_v49, %v1085_v11  ;;  %vm1088_vm1 = vcmp.lt.s32.totalorder %v2172_v12, 1  ;;  %v1072_v54 = vshrl.u32 %v1489_v13, %v1071_v10 }
 0x15c   : > { %1178 = vst [vmem:[%s1903_s14 + $0x20] sm:$0xff] %v1170_v5  ;;  %vm1091_vm2 = vcmp.lt.s32.totalorder %v2172_v12, 4  ;;  %v1096_v45 = vsel %vm1088_vm1, %v1075_v32, %v1078_v6  ;;  %vm1089_vm3 = vcmp.lt.s32.totalorder %v2172_v12, 2  ;;  %vm1090_vm4 = vcmp.lt.s32.totalorder %v2172_v12, 3 }
 0x15d   : > { %v1018_v41 = vsub.s32 0, %v1016_v63  ;;  %v1097_v24 = vsel %vm1091_vm2, %v1084_v57, 920167782  ;;  %v1101_v36 = vsel %vm1091_vm2, %v1087_v21, 1326507024  ;;  %v1100_v0 = vsel %vm1088_vm1, %v1078_v6, %v1081_v42 }
 0x15e   : > { %v1093_v16 = vsel %vm1091_vm2, %v1081_v42, 2102212464  ;;  %v1098_v26 = vsel %vm1090_vm4, %v1081_v42, %v1097_v24  ;;  %v942_v9 = vand.u32 3, %v941_v25  ;;  %v1102_v7 = vsel %vm1090_vm4, %v1084_v57, %v1101_v36 }
 0x15f   : > { %v1291_v14 = vmin.u32 %v1018_v41, %v1016_v63  ;;  %v1099_v13 = vsel %vm1089_vm3, %v1096_v45, %v1098_v26  ;;  %v1104_v50 = vshll.u32 %v1064_v52, 8  ;;  %v1092_v56 = vsel %vm1088_vm1, %v1072_v54, %v1075_v32 }
 0x160   : > { %v1094_v60 = vsel %vm1090_vm4, %v1078_v6, %v1093_v16  ;;  %v1103_v61 = vsel %vm1089_vm3, %v1100_v0, %v1102_v7  ;;  %vm940_vm5 = vweird.f32 %v1917_v30  ;;  %vm943_vm6 = vcmp.lt.s32.totalorder %v942_v9, 2 }
 0x161   : > { %v1020_v28 = vclz %v1291_v14  ;;  %v2215_v2 = vmul.u32.u64.low %v1104_v50, %v1099_v13  ;;  %v2216_v51 = vmul.u32.u64.high %v1104_v50, %v1099_v13, %v2215_v2  ;;  %vm947_vm7 = vcmp.eq.s32.totalorder %v942_v9, 2 }
 0x162   : > { %v1411_v10 = vpop.eup %1410  ;;  %v2218_v20 = vmul.u32.u64.low %v1104_v50, %v1103_v61  ;;  %v2219_v55 = vmul.u32.u64.high %v1104_v50, %v1103_v61, %v2218_v20  ;;  %v1095_v58 = vsel %vm1089_vm3, %v1092_v56, %v1094_v60  ;;  %vm944_vm9 = vcmp.eq.s32.totalorder %v942_v9, 0 }
 0x163   : > { %v1292_v29 = vadd.s32 4294967294, %v1020_v28  ;;  %v1413_v62 = vpop.eup %1412  ;;  %v948_v34 = vxor.u32 2147483648, %v1411_v10  ;;  %v1114_v1 = vadd.s32 1, %v2216_v51  ;;  %v1008_v27 = vadd.s32 %v2139_v35, %v2145_v33 }
 0x164   : > { %v945_v44 = vxor.u32 2147483648, %v1413_v62  ;;  %v1111_v59 = vmul.u32 %v1104_v50, %v1095_v58  ;;  %vm1113_vm12 = vc.u32 %v2219_v55, %v2215_v2  ;;  %v1038_v30 = vsub.s32 4, %v2186_v3 }
 0x165   : > { %vm1293_vm8 = vcmp.lt.s32.totalorder %v1292_v29, 0  ;;  %v949_v8 = vsel %vm947_vm7, %v948_v34, %v1413_v62  ;;  %v1115_v39 = vsel %vm1113_vm12, %v1114_v1, %v2216_v51  ;;  %vm954_vm10 = vcmp.lt.s32.totalorder %v2014_v23, 0 }
 0x166   : > { %v1023_v22 = vsel %vm1293_vm8, 0, %v1292_v29  ;;  %v946_v4 = vsel %vm944_vm9, %v1411_v10, %v945_v44  ;;  %v1116_v19 = vadd.s32 %v1115_v39, %v1111_v59  ;;  %vm953_vm11 = vcmp.le.f32.partialorder %v952_v53, 0.7853982  ;;  %v1422_v39 = vld [vmem:[%s2308_s3] ss:$0 sm:$0xff] }
 0x167   : > { %v1024_v43 = vsub.s32 32, %v1023_v22  ;;  %v1028_v31 = vsub.s32 4294967266, %v1023_v22  ;;  %v950_v48 = vsel %vm943_vm6, %v946_v4, %v949_v8  ;;  %v1025_v18 = vshll.u32 %v1016_v63, %v1023_v22 }
 0x168   : > { %v951_v12 = vsel %vm940_vm5, nan, %v950_v48  ;;  %v1117_v33 = vadd.s32 536870912, %v1116_v19  ;;  %v1039_v21 = vsel %vm954_vm10, %v1038_v30, %v2186_v3  ;;  %v1112_v26 = vadd.s32 %v2215_v2, %v2219_v55 }
 0x169   : > { %v1026_v38 = vshrl.u32 %v1008_v27, %v1024_v43  ;;  %v1029_v32 = vadd.s32 127, %v1028_v31  ;;  %v1171_v17 = vmul.f32 %v1872_v47, %v951_v12  ;;  %v1041_v45 = vsel %vm953_vm11, 0, %v1039_v21 }
 0x16a   : > { %v1118_v46 = vshrl.u32 %v1117_v33, 30  ;;  %v1045_v14 = vadd.s32 3, %v1041_v45  ;;  %vm1044_vm1 = vweird.f32 %v2014_v23  ;;  %vm1058_vm2 = vcmp.lt.s32.totalorder %v2081_v15, 0 }
 0x16b   : > { %v1027_v37 = vor.u32 %v1026_v38, %v1025_v18  ;;  %v1030_v35 = vshll.u32 %v1029_v32, 23  ;;  %1179 = vst [vmem:[%s1903_s14 + $0x28] sm:$0xff] %v1171_v17  ;;  %vm1057_vm3 = vcmp.le.f32.partialorder %v1056_v40, 0.7853982  ;;  %vm1148_vm7 = vweird.f32 %v2081_v15 }
 0x16c   : > { %v1119_v11 = vshll.u32 %v1118_v46, 30  ;;  %v1046_v13 = vand.u32 3, %v1045_v14  ;;  %v1142_v8 = vsub.s32 4, %v1118_v46 }
 0x16d   : > { %v1031_v5 = vor.u32 4788187, %v1030_v35  ;;  %v1034_v57 = vcvt.s32.f32 %v1027_v37 }
 0x16e   : > { %v1120_v63 = vsub.s32 %v1116_v19, %v1119_v11  ;;  %vm1051_vm14 = vcmp.eq.s32.totalorder %v1046_v13, 2  ;;  %vm1048_vm15 = vcmp.eq.s32.totalorder %v1046_v13, 0  ;;  %vm1047_vm0 = vcmp.lt.s32.totalorder %v1046_v13, 2 }
 0x16f   : > { %v1032_v6 = vand.u32 2147483647, %v1031_v5  ;;  %v1143_v4 = vsel %vm1058_vm2, %v1142_v8, %v1118_v46 }
 0x170   : > { %v1122_v25 = vsub.s32 0, %v1120_v63  ;;  %v1145_v27 = vsel %vm1057_vm3, 0, %v1143_v4 }
 0x171   : > { %v1035_v49 = vmul.f32 %v1034_v57, %v1032_v6  ;;  %v1149_v43 = vadd.s32 3, %v1145_v27 }
 0x172   : > { %v1295_v54 = vmin.u32 %v1122_v25, %v1120_v63 }
 0x173   : > { %v1036_v42 = vxor.u32 2147483648, %v1035_v49 }
 0x174   : > { %v1124_v24 = vclz %v1295_v54 }
 0x175   : > { %v1037_v52 = vsel %vm954_vm10, %v1036_v42, %v1035_v49 }
 0x176   : > { %v1040_v41 = vsel %vm953_vm11, %v2014_v23, %v1037_v52  ;;  %v1296_v36 = vadd.s32 4294967294, %v1124_v24 }
 0x177   : > { %1414 = vcosq.f32 %v1040_v41 }
 0x178   : > { %1416 = vsinq.f32 %v1040_v41  ;;  %vm1297_vm13 = vcmp.lt.s32.totalorder %v1296_v36, 0 }
 0x179   : > { %v1127_v16 = vsel %vm1297_vm13, 0, %v1296_v36 }
 0x17a   : > { %v1128_v0 = vsub.s32 32, %v1127_v16  ;;  %v1132_v9 = vsub.s32 4294967266, %v1127_v16  ;;  %v1129_v53 = vshll.u32 %v1120_v63, %v1127_v16 }
 0x17c   : > { %v1130_v7 = vshrl.u32 %v1112_v26, %v1128_v0  ;;  %v1133_v50 = vadd.s32 127, %v1132_v9 }
 0x17e   : > { %v1131_v60 = vor.u32 %v1130_v7, %v1129_v53  ;;  %v1134_v61 = vshll.u32 %v1133_v50, 23 }
 0x180   : > { %v1135_v29 = vor.u32 4788187, %v1134_v61  ;;  %v1138_v62 = vcvt.s32.f32 %v1131_v60 }
 0x181   : > { %v1415_v3 = vpop.eup %1414 }
 0x182   : > { %v1417_v28 = vpop.eup %1416  ;;  %v1052_v56 = vxor.u32 2147483648, %v1415_v3  ;;  %v1136_v55 = vand.u32 2147483647, %v1135_v29 }
 0x183   : > { %v1049_v51 = vxor.u32 2147483648, %v1417_v28 }
 0x184   : > { %v1053_v10 = vsel %vm1051_vm14, %v1052_v56, %v1417_v28  ;;  %v1139_v58 = vmul.f32 %v1138_v62, %v1136_v55 }
 0x185   : > { %v1050_v20 = vsel %vm1048_vm15, %v1415_v3, %v1049_v51 }
 0x186   : > { %v1054_v2 = vsel %vm1047_vm0, %v1050_v20, %v1053_v10  ;;  %v1140_v22 = vxor.u32 2147483648, %v1139_v58 }
 0x187   : > { %v1055_v34 = vsel %vm1044_vm1, nan, %v1054_v2 }
 0x188   : > { %v1172_v44 = vmul.f32 %v1872_v47, %v1055_v34  ;;  %v1141_v1 = vsel %vm1058_vm2, %v1140_v22, %v1139_v58  ;;  %v1150_v47 = vand.u32 3, %v1149_v43 }
 0x189   : > { %v1144_v23 = vsel %vm1057_vm3, %v2081_v15, %v1141_v1 }
 0x18a   : > { %1180 = vst [vmem:[%s1903_s14 + $0x30] sm:$0xff] %v1172_v44  ;;  %1418 = vcosq.f32 %v1144_v23  ;;  %vm1155_vm4 = vcmp.eq.s32.totalorder %v1150_v47, 2  ;;  %vm1152_vm5 = vcmp.eq.s32.totalorder %v1150_v47, 0  ;;  %vm1151_vm6 = vcmp.lt.s32.totalorder %v1150_v47, 2 }
 0x18b   : > { %1420 = vsinq.f32 %v1144_v23 }
 0x194   : > { %v1419_v31 = vpop.eup %1418 }
 0x195   : > { %v1421_v48 = vpop.eup %1420  ;;  %v1156_v18 = vxor.u32 2147483648, %v1419_v31 }
 0x196   : > { %v1153_v59 = vxor.u32 2147483648, %v1421_v48 }
 0x197   : > { %v1157_v40 = vsel %vm1155_vm4, %v1156_v18, %v1421_v48 }
 0x198   : > { %v1154_v12 = vsel %vm1152_vm5, %v1419_v31, %v1153_v59 }
 0x199   : > { %v1158_v38 = vsel %vm1151_vm6, %v1154_v12, %v1157_v40 }
 0x19a   : > { %v1159_v32 = vsel %vm1148_vm7, nan, %v1158_v38 }
 0x19b   : > { %v1173_v17 = vmul.f32 %v1422_v39, %v1159_v32 }
 0x19d   : > { %1181 = vst [vmem:[%s1903_s14 + $0x38] sm:$0xff] %v1173_v17 }
 0x19e   : > { %1436 = shalt.err (!%p1433_p3)
}
 0x19f   : > { %s1437_s9 = scalar_lea.hbm %s2254_s28, 1024  ;;  %s1441_s12 = scalar_lea.hbm %s2309_s4, 2048 }
 0x1a0   : > { %p1438_p4 = scmp.ne.s32.totalorder %s2254_s28, %s1437_s9  ;;  %p1442_p9 = scmp.lt.u32.totalorder %s2254_s28, %s2309_s4 }
 0x1a1   : > { %p1443_p10 = scmp.lt.u32.totalorder %s1441_s12, %s1437_s9  ;;  %p1445_p12 = scmp.lt.u32.totalorder %s1437_s9, %s2254_s28 }
 0x1a2   : > { %p1439_p7 = pnand %p1438_p4, %p1561_p5 }
 0x1a3   : > { %p1444_p11 = por %p1443_p10, %p1442_p9 }
 0x1a4   : > { %p1440_p8 = pneg %p1439_p7 }
 0x1a5   : > { %p1446_p13 = por %p1445_p12, %p1444_p11 }
 0x1a7   : > { %p1447_p0 = pnand %p1446_p13, %p1440_p8 }
 0x1a9   : > { %1450 = shalt.err (!%p1447_p0)
}
 0x1aa   : > { %s1496_s20 = smov 128   ;;  %s1497_s23 = smov 8  }
 0x1ab   : > { %1337 = dma.vmem_to_hbm [thread:$0]  (%p1561_p5), %s2256_s22, 1024, %s2254_s28, %s2264_s19, %s1496_s20, %s1496_s20, %s1497_s23  }
 0x1ac PF: > { %p1343_p1 = scmp.ge.s32.totalorder %s1485_s18, 2  ;;  %s1211_s27 = sand.u32 1, %s1473_s15  }
 0x1ad   : > { %s1212_s29 = scalar_lea.sflag [#allocation3], %s1211_s27 }
 0x1ae   : > { %p1340_p2 = pnand %p1343_p1, %p1565_p6 }
 0x1b0   : > { %1468 = dma.done.wait (!%p1340_p2), %s1212_s29, 1024  }
 0x1b1   : > { %1470 = vsyncadd (!%p1340_p2), %s1212_s29, 4294966272  ;;  %p14_p3 = scmp.ge.s32.totalorder %s1548_s21, 4   ;;  %s2324_s15 = smov %s1477_s16 }
 0x1b2   : > { %s2325_s16 = smov %s1481_s17  ;;  %s2326_s17 = smov %s1559_s24 }
 0x1b3   : > { %s2327_s18 = smov %s1548_s21  ;;  %16 = sbr.rel (!%p14_p3) target bundleno = 3 (0x3), region = 71 }
 0x1ba   :  { %1217 = vsyncpa [#allocation3], 1 }
 0x1bb   :  { %1219 = vsyncpa [#allocation3 + $0x1], 1 }

</bundles_post_ra>
